<compile_context>
chip_gen: v6e
topology: v6e:2x2x1
jax: 0.10.0
libtpu: 0.0.40
codegen_flags: <defaults>
</compile_context>

<pallas_src>
import functools
import math

import jax
import jax.numpy as jnp
from jax.experimental import pallas as pl
from jax.experimental.pallas import tpu as pltpu


_LANE = 128
_SUBLANE = 8
_MAX_LANE_TILE = 2048
# f32 sigmoid(x) rounds to exactly 1.0 for x above ~24*ln(2) (~16.6355); used for threshold == 1.0.
_F32_SIGMOID_SAT = 24.0 * math.log(2.0)


def _bin_threshold_kernel(x_ref, mask_ref, o_ref, *, logit: float):
    x = x_ref[...]                       # (tm, td)
    keep = mask_ref[...] == 0            # (1, td) int32 -> broadcasts over rows
    # sigmoid(x) >= t  <=>  x >= logit(t): native dtype, no EUP transcendental, no f32 upcast.
    binned = (x >= logit).astype(x.dtype)
    o_ref[...] = jnp.where(keep, x, binned)


def _threshold_to_logit(threshold: float) -> float:
    t = float(threshold)
    if t <= 0.0:
        # sigmoid(x) >= t is always true except for NaN (NaN >= -inf is also False -> matches ref).
        return float("-inf")
    if t > 1.0:
        # sigmoid(x) <= 1 < t: never true, even for x = +inf or NaN (x >= NaN is always False).
        return float("nan")
    if t == 1.0:
        # f32 sigmoid saturates to exactly 1.0 above this, matching the float reference.
        return _F32_SIGMOID_SAT
    return math.log(t / (1.0 - t))  # computed in double precision


def _chip_budgets():
    """(per-block byte cap, vmem_limit_bytes) chosen from the chip's physical VMEM."""
    try:
        vmem_cap = int(pltpu.get_tpu_info().vmem_capacity_bytes)
    except Exception:
        vmem_cap = 64 * 1024 * 1024  # conservative (v7x-sized) fallback
    if vmem_cap >= 128 * 1024 * 1024:          # v5e / v6e
        return 8 * 1024 * 1024, 64 * 1024 * 1024
    return 4 * 1024 * 1024, 32 * 1024 * 1024   # v7x or unknown


def bin_column_threshold(x: jax.Array, col_idxs: jax.Array, threshold: float = 0.5,
                         donate_x: bool = False) -> jax.Array:
    """JAX/Pallas equivalent of BinColumnThreshold.forward (functional, no in-place)."""
    orig_shape = x.shape
    D = int(orig_shape[-1])

    # TODO(synk): requires concrete (non-traced) col_idxs, mirroring the nn.Module parameter.
    if col_idxs.size == 0:
        return x

    logit = _threshold_to_logit(threshold)
    mask1d = jnp.zeros((D,), dtype=jnp.int32).at[col_idxs].set(1)

    x2d = x.reshape(-1, D)               # free (row-major contiguous)
    M = x2d.shape[0]
    dtype_bytes = x2d.dtype.itemsize
    max_block, vmem_limit = _chip_budgets()

    # ---- lane-dense folding: only when it's FREE (no pad / slice copies) and D is small ----
    k = _LANE // math.gcd(D, _LANE)      # minimal k with (k*D) % 128 == 0
    fold = (k > 1) and (D < 256) and (M % k == 0) and (M >= k)
    if fold:
        x_work = x2d.reshape(M // k, k * D)              # free reshape (no copy)
        mask = jnp.tile(mask1d, k).reshape(1, k * D)
    else:
        # Unfolded path: full-width row blocks -> contiguous HBM DMA, single pass.
        # (Accepts masked partial lane stores when D % 128 != 0; still cheaper than
        #  the pad + slice passes the old folding fallback paid.)
        # TODO(synk): sparse-column aliased fast path (scalar-prefetched lane-tile list +
        # input/output aliasing) could beat the full-copy roofline for wide D with few
        # binned columns, but it requires a donatable x; not implemented here.
        x_work = x2d
        mask = mask1d.reshape(1, D)

    Mr, Dw = x_work.shape

    # ---- column (lane) tiling: only for extremely wide rows ----
    if Dw * _SUBLANE * dtype_bytes <= max_block:
        td = Dw                                            # whole (possibly folded) width
    else:
        td = min(_MAX_LANE_TILE,
                 max(_LANE, (max_block // (_SUBLANE * dtype_bytes)) // _LANE * _LANE))

    # ---- row tiling (VMEM-budgeted) ----
    rows_budget = max(_SUBLANE, (max_block // (td * dtype_bytes)) // _SUBLANE * _SUBLANE)
    tm = min(Mr, rows_budget)
    if tm < Mr:
        tm = max(_SUBLANE, (tm // _SUBLANE) * _SUBLANE)
    elif Mr > _SUBLANE:
        # Guarantee >= 2 row blocks so both of v7x's TensorCores get work; on 1-TC
        # chips this only costs one extra ~0.35us pipeline step.
        tm = max(_SUBLANE, ((pl.cdiv(Mr, 2) + _SUBLANE - 1) // _SUBLANE) * _SUBLANE)

    n_col = pl.cdiv(Dw, td)
    n_row = pl.cdiv(Mr, tm)
    # Column axis outermost so the mask block index is constant across the inner row loop.
    grid = (n_col, n_row)

    kernel = functools.partial(_bin_threshold_kernel, logit=float(logit))

    out = pl.pallas_call(
        kernel,
        out_shape=jax.ShapeDtypeStruct((Mr, Dw), x_work.dtype),
        grid_spec=pltpu.PrefetchScalarGridSpec(
            num_scalar_prefetch=0,
            grid=grid,
            in_specs=[
                pl.BlockSpec((tm, td), lambda j, i: (i, j)),
                pl.BlockSpec((1, td), lambda j, i: (0, j)),   # mask resident across row steps
            ],
            out_specs=pl.BlockSpec((tm, td), lambda j, i: (i, j)),
        ),
        compiler_params=pltpu.CompilerParams(
            dimension_semantics=("parallel", "parallel"),
            vmem_limit_bytes=vmem_limit,
        ),
        cost_estimate=pl.CostEstimate(
            flops=2 * Mr * Dw,
            transcendentals=0,
            bytes_accessed=2 * Mr * Dw * dtype_bytes + Dw * 4,
        ),
        input_output_aliases=({0: 0} if donate_x else {}),
    )(x_work, mask)

    if fold:
        out = out.reshape(M, D)           # free reshape
    return out.reshape(orig_shape)


def _reference(x, col_idxs, threshold):
    if col_idxs.size == 0:
        return x
    sub = x[..., col_idxs]
    new = (jax.nn.sigmoid(sub.astype(jnp.float32)) >= threshold).astype(x.dtype)
    return x.at[..., col_idxs].set(new)


if __name__ == "__main__":
    key = jax.random.PRNGKey(0)
    k1, k2, k3, k4 = jax.random.split(key, 4)

    threshold = 0.5
    col_idxs = jnp.array([0, 3, 5, 10, 31], dtype=jnp.int32)

    # 2-D case: (batch, features) -- D=32, M%4==0 exercises the free lane-folding path.
    x2 = jax.random.normal(k1, (4, 32), dtype=jnp.float32)
    out2 = jax.block_until_ready(bin_column_threshold(x2, col_idxs, threshold))
    assert jnp.allclose(out2, _reference(x2, col_idxs, threshold)), "2-D mismatch"

    # 3-D longitudinal case: (batch, seq, features).
    x3 = jax.random.normal(k2, (2, 8, 32), dtype=jnp.float32)
    out3 = jax.block_until_ready(bin_column_threshold(x3, col_idxs, threshold))
    assert jnp.allclose(out3, _reference(x3, col_idxs, threshold)), "3-D mismatch"

    # Row count not divisible by the fold factor -> unfolded path, 2 row blocks + edge masking.
    x4 = jax.random.normal(k3, (10, 32), dtype=jnp.float32)
    out4 = jax.block_until_ready(bin_column_threshold(x4, col_idxs, threshold))
    assert jnp.allclose(out4, _reference(x4, col_idxs, threshold)), "unfolded mismatch"

    # Non-0.5 threshold (nonzero logit).
    out4b = jax.block_until_ready(bin_column_threshold(x4, col_idxs, 0.3))
    assert jnp.allclose(out4b, _reference(x4, col_idxs, 0.3)), "threshold=0.3 mismatch"

    # D already a multiple of 128 (no folding); 16 rows -> split into 2 row blocks.
    col_idxs_128 = jnp.array([0, 7, 64, 127], dtype=jnp.int32)
    x5 = jax.random.normal(k4, (16, 128), dtype=jnp.float32)
    out5 = jax.block_until_ready(bin_column_threshold(x5, col_idxs_128, threshold))
    assert jnp.allclose(out5, _reference(x5, col_idxs_128, threshold)), "D=128 mismatch"

    # Empty col_idxs -> passthrough.
    out6 = jax.block_until_ready(bin_column_threshold(x2, jnp.array([], dtype=jnp.int32), threshold))
    assert jnp.allclose(out6, x2), "empty col_idxs mismatch"

    print("KERNEL_OK")
</pallas_src>

<mosaic_0001>
module attributes {stable_mosaic.version = 11 : i64} {
  func.func @_bin_threshold_kernel(%arg0: i32, %arg1: i32, %arg2: memref<1x128xf32, #tpu.memory_space<vmem>>, %arg3: memref<1x128xi32, #tpu.memory_space<vmem>>, %arg4: memref<1x128xf32, #tpu.memory_space<vmem>>) attributes {dimension_semantics = [#tpu.dimension_semantics<parallel>, #tpu.dimension_semantics<parallel>], iteration_bounds = array<i64: 1, 1>, scalar_prefetch = 0 : i64, scratch_operands = 0 : i64, tpu.core_type = #tpu.core_type<tc>, window_params = [{transform_indices = @transform_0, window_bounds = array<i64: 1, 128>}, {transform_indices = @transform_1, window_bounds = array<i64: 1, 128>}, {transform_indices = @transform_2, window_bounds = array<i64: 1, 128>}]} {
    %c0 = arith.constant 0 : index
    %c0_0 = arith.constant 0 : index
    %0 = vector.load %arg2[%c0, %c0_0] : memref<1x128xf32, #tpu.memory_space<vmem>>, vector<1x128xf32>
    %c0_1 = arith.constant 0 : index
    %c0_2 = arith.constant 0 : index
    %1 = vector.load %arg3[%c0_1, %c0_2] : memref<1x128xi32, #tpu.memory_space<vmem>>, vector<1x128xi32>
    %c0_i32 = arith.constant 0 : i32
    %2 = vector.broadcast %c0_i32 : i32 to vector<1x128xi32>
    %3 = arith.cmpi eq, %1, %2 : vector<1x128xi32>
    %cst = arith.constant 0.000000e+00 : f32
    %4 = vector.broadcast %cst : f32 to vector<1x128xf32>
    %5 = arith.cmpf oge, %0, %4 : vector<1x128xf32>
    %6 = arith.extui %5 : vector<1x128xi1> to vector<1x128xi32>
    %7 = arith.sitofp %6 : vector<1x128xi32> to vector<1x128xf32>
    %8 = arith.select %3, %0, %7 : vector<1x128xi1>, vector<1x128xf32>
    %c0_3 = arith.constant 0 : index
    %c0_4 = arith.constant 0 : index
    %9 = vector.load %arg4[%c0_3, %c0_4] : memref<1x128xf32, #tpu.memory_space<vmem>>, vector<1x128xf32>
    tpu.vector_store %arg4[%c0_3, %c0_4], %8 {strides = array<i32>} : memref<1x128xf32, #tpu.memory_space<vmem>>, vector<1x128xf32>,
    return
  }
  func.func @transform_0(%arg0: i32, %arg1: i32) -> (i32, i32) {
    %c0_i32 = arith.constant 0 : i32
    return %arg1, %arg0 : i32, i32
  }
  func.func @transform_1(%arg0: i32, %arg1: i32) -> (i32, i32) {
    %c0_i32 = arith.constant 0 : i32
    %c0_i32_0 = arith.constant 0 : i32
    return %c0_i32, %arg0 : i32, i32
  }
  func.func @transform_2(%arg0: i32, %arg1: i32) -> (i32, i32) {
    %c0_i32 = arith.constant 0 : i32
    return %arg1, %arg0 : i32, i32
  }
}

</mosaic_0001>

<bundles_post_ra>
// kernel: tpu_custom_call.1
= control target key start
LH: loop header
LB: loop body
LE: loop exit
PB: predicated region body
PF: predicated region fallthrough
CT: control target
= control target key end

     0   :  { %7 = vsyncpa [#allocation3], 0  ;;  %s122_s0 = inlined_call_operand.hbm [shape: f32[1,128], index: 0, kind: input, shape index: {}]   ;;  %s123_s1 = inlined_call_operand.vmem [shape: s32[1,128], index: 1, kind: input, shape index: {}]   ;;  %s124_s2 = inlined_call_operand.hbm [shape: f32[1,128], index: 2, kind: output, shape index: {}]  }
   0x1   :  { %8 = vsyncpa [#allocation4], 0  ;;  %s95_s9 = smov [#allocation2]  }
   0x2   :  { %s15_s10 = sshll.u32 %s95_s9, 4  ;;  %s16_s10 = int_to_ptr.vmem [resolvable:$true] %s15_s10 }
   0x3   :  { %s59_s11 = scalar_lea.vmem %s16_s10, 16  ;;  %s63_s12 = scalar_lea.vmem %s16_s10, 32 }
   0x4   :  { %p60_p0 = scmp.ne.s32.totalorder %s16_s10, %s59_s11  ;;  %p64_p1 = scmp.lt.s32.totalorder %s16_s10, %s16_s10 }
   0x5   :  { %p65_p2 = scmp.lt.s32.totalorder %s63_s12, %s59_s11 }
   0x7   :  { %p66_p3 = por %p65_p2, %p64_p1 }
   0x9   :  { %p67_p4 = pnand %p66_p3, %p60_p0 }
   0xb   :  { %70 = shalt.err (!%p67_p4)
}
   0xc   :  { %18 = dma.hbm_to_vmem [thread:$0]  %s122_s0, 16, %s16_s10, [#allocation3]  }
   0xd   :  { %91 = dma.done.wait [#allocation3], 16  }
   0xe   :  { %92 = vsyncadd [#allocation3], 4294967280  ;;  %s96_s15 = smov [#allocation5]   ;;  %v24_v0 = vld [vmem:[#allocation2] sm:$0x1]  ;;  %v97_v2 = vmov 0.0  }
   0xf   :  { %s38_s16 = sshll.u32 %s96_s15, 4  ;;  %v25_v1 = vld [vmem:[%s123_s1] sm:$0x1]  ;;  %vm27_vm1 = vcmp.ge.f32.partialorder %v24_v0, 0.0  ;;  %s39_s16 = int_to_ptr.vmem [resolvable:$true] %s38_s16 }
  0x10   :  { %vm26_vm0 = vcmp.eq.s32.totalorder %v25_v1, 0  ;;  %v47_v3 = vsel %vm27_vm1, 1.0, %v97_v2  ;;  %s71_s19 = scalar_lea.vmem %s39_s16, 16  ;;  %s75_s20 = scalar_lea.vmem %s39_s16, 32 }
  0x11   :  { %v30_v4 = vsel %vm26_vm0, %v24_v0, %v47_v3  ;;  %p72_p5 = scmp.ne.s32.totalorder %s39_s16, %s71_s19  ;;  %p76_p6 = scmp.lt.s32.totalorder %s39_s16, %s39_s16 }
  0x12   :  { %31 = vst [vmem:[#allocation5] sm:$0x1] %v30_v4  ;;  %p77_p7 = scmp.lt.s32.totalorder %s75_s20, %s71_s19 }
  0x14   :  { %p78_p8 = por %p77_p7, %p76_p6 }
  0x16   :  { %p79_p9 = pnand %p78_p8, %p72_p5 }
  0x18   :  { %82 = shalt.err (!%p79_p9)
}
  0x19   :  { %41 = dma.vmem_to_hbm [thread:$0]  %s39_s16, 16, %s124_s2, [#allocation4]  }
  0x1a   :  { %93 = dma.done.wait [#allocation4], 16  }
  0x1b   :  { %94 = vsyncadd [#allocation4], 4294967280 }
  0x1c   :  { %45 = vsyncpa [#allocation3], 1 }
  0x1d   :  { %46 = vsyncpa [#allocation4], 1 }

</bundles_post_ra>
